<compile_context>
chip_gen: v7x
topology: tpu7x:2x2x1
jax: 0.10.0
libtpu: 0.0.40
codegen_flags: <defaults>
</compile_context>

<pallas_src>
import math

import jax
import jax.numpy as jnp
from jax import lax
from jax.experimental import pallas as pl
from jax.experimental.pallas import tpu as pltpu


# ----------------------------------------------------------------------------
# Kernel: chunked CustomLSTM recurrence.
# Column layout of all 4H-wide slabs: [ ingate | forgetgate | outgate | cellgate(x2) ].
# Packed recurrent state layout:       [ h | c ]  (B, 2H), f32, VMEM-resident.
# ----------------------------------------------------------------------------
def _custom_lstm_recurrence_kernel(x_ref, h0_ref, c0_ref, wx_ref, whc_ref, b_ref,
                                   y_ref, cn_ref, state_sc):
    T = x_ref.shape[0]
    H = y_ref.shape[-1]

    @pl.when(pl.program_id(0) == 0)
    def _():
        state_sc[:, :H] = h0_ref[...].astype(jnp.float32)
        state_sc[:, H:] = c0_ref[...].astype(jnp.float32)

    # Hoist loop-invariant loads out of the recurrence (weights + folded bias stay in vregs).
    wx_v = wx_ref[...]                                   # (IN, 4H)  MXU operand
    whc_v = whc_ref[...]                                 # (2H, 4H)  MXU operand
    bias = b_ref[...].astype(jnp.float32)                # (1, 4H)   i/f/o summed bias, cellgate 0

    def step(s, carry):
        # x-projection for this timestep: independent of the recurrent state -> off the
        # serial critical path (scheduler can issue it ahead within the unrolled window).
        xp = jnp.dot(x_ref[s].astype(wx_v.dtype), wx_v,
                     preferred_element_type=jnp.float32) + bias          # (B, 4H) f32

        st = state_sc[...]                                                # (B, 2H) f32 [h | c]
        # Single fused recurrent MXU dot per step: [h | c] @ [[W_hh; W_ghh*2] ; [W_ch; 0]].
        pre = xp + jnp.dot(st.astype(whc_v.dtype), whc_v,
                           preferred_element_type=jnp.float32)            # (B, 4H) f32

        # One EUP pass over the whole slab; cellgate recovered via tanh(z) = 2*sigmoid(2z) - 1
        # (its pre-activation columns were pre-scaled by 2 at param-prep time).
        sg = jax.nn.sigmoid(pre)
        i_g = sg[:, 0 * H:1 * H]
        f_g = sg[:, 1 * H:2 * H]
        o_g = sg[:, 2 * H:3 * H]
        g_g = 2.0 * sg[:, 3 * H:4 * H] - 1.0                              # cheap VPU fixup

        cx = st[:, H:]                                                    # lane-aligned with f_g
        cy = f_g * cx + i_g * g_g
        hy = o_g * jnp.tanh(cy)

        state_sc[:, :H] = hy
        state_sc[:, H:] = cy
        y_ref[s] = hy.astype(y_ref.dtype)
        return carry

    # Bounded unroll: scheduler visibility without instruction-memory blowup at large T.
    lax.fori_loop(0, T, step, 0, unroll=min(T, 8))

    # Final cell-state accumulator: written only once, on the last grid step.
    @pl.when(pl.program_id(0) == pl.num_programs(0) - 1)
    def _():
        cn_ref[...] = state_sc[:, H:].astype(cn_ref.dtype)


# ----------------------------------------------------------------------------
# One-time parameter preparation (transpose + bias folding + packing + 2x cellgate prescale).
# ----------------------------------------------------------------------------
def prepare_custom_lstm_params(raw):
    H = raw["weight_hh"].shape[1]
    dt = raw["weight_ih"].dtype
    # NOTE: the spec adds bias_gh / bias_ghh to the *transposed weight matrices* — preserved.
    # Cellgate columns pre-scaled by 2 so the kernel can use tanh(z) = 2*sigmoid(2z) - 1.
    wx = jnp.concatenate(
        [raw["weight_ih"].T, 2.0 * (raw["weight_gh"].T + raw["bias_gh"])], axis=1)        # (IN, 4H)
    wh = jnp.concatenate(
        [raw["weight_hh"].T, 2.0 * (raw["weight_ghh"].T + raw["bias_ghh"])], axis=1)      # (H, 4H)
    wc = jnp.concatenate(
        [raw["weight_ch"].T, jnp.zeros((H, H), dt)], axis=1)                              # (H, 4H)
    whc = jnp.concatenate([wh, wc], axis=0)                                               # (2H, 4H)
    b = jnp.concatenate(
        [raw["bias_ih"] + raw["bias_hh"] + raw["bias_ch"], jnp.zeros((H,), dt)])          # (4H,)
    return {"wx": wx, "whc": whc, "b": b.reshape(1, 4 * H)}


# ----------------------------------------------------------------------------
# Sequence driver: CustomLSTM cell applied over a time-major sequence.
# ----------------------------------------------------------------------------
def custom_lstm_sequence(x, h0, c0, params, *, time_chunk=None, mxu_dtype=None):
    """x: (S, B, IN) time-major, h0/c0: (B, H). Returns (y (S,B,H), h_n (B,H), c_n (B,H))."""
    S, B, IN = x.shape
    H = h0.shape[-1]
    T = S if time_chunk is None else min(time_chunk, S)
    assert S % T == 0, "time_chunk must divide the sequence length"

    wx, whc, b = params["wx"], params["whc"], params["b"]
    if mxu_dtype is not None:
        # bf16 MXU operands; f32 accumulation + f32 recurrent state bound drift.
        wx = wx.astype(mxu_dtype)
        whc = whc.astype(mxu_dtype)
        x = x.astype(mxu_dtype)

    out_shapes = (
        jax.ShapeDtypeStruct((S, B, H), h0.dtype),      # per-step hidden outputs
        jax.ShapeDtypeStruct((B, H), h0.dtype),         # final cell state
    )
    grid_spec = pltpu.PrefetchScalarGridSpec(
        num_scalar_prefetch=0,
        grid=(S // T,),
        in_specs=[
            pl.BlockSpec((T, B, IN), lambda t: (t, 0, 0)),       # raw x chunk (no f32 xp HBM intermediate)
            pl.BlockSpec((B, H), lambda t: (0, 0)),              # h0
            pl.BlockSpec((B, H), lambda t: (0, 0)),              # c0
            pl.BlockSpec((IN, 4 * H), lambda t: (0, 0)),         # packed x-projection slab (resident)
            pl.BlockSpec((2 * H, 4 * H), lambda t: (0, 0)),      # packed fused [h|c] slab (resident)
            pl.BlockSpec((1, 4 * H), lambda t: (0, 0)),          # folded i/f/o bias
        ],
        out_specs=[
            pl.BlockSpec((T, B, H), lambda t: (t, 0, 0)),        # per-chunk hidden outputs
            pl.BlockSpec((B, H), lambda t: (0, 0)),              # c_n (resident accumulator)
        ],
        scratch_shapes=[
            pltpu.VMEM((B, 2 * H), jnp.float32),                 # packed [h | c] state, persists across grid steps
        ],
    )
    y, cn = pl.pallas_call(
        _custom_lstm_recurrence_kernel,
        out_shape=out_shapes,
        grid_spec=grid_spec,
        compiler_params=pltpu.CompilerParams(
            dimension_semantics=("arbitrary",),                  # recurrence: time chunks are sequential
            # Tiny at toy shapes; re-derive T against the 64 MiB VMEM bound when porting to v7x
            # at production H/S (resident set ~ 2x(T*B*IN*4) + 2x(T*B*H*4) + weight slabs + state).
            vmem_limit_bytes=32 * 1024 * 1024,
        ),
    )(x, h0, c0, wx, whc, b)
    hn = y[-1]                                                   # h_n duplicates y's last timestep
    return y, hn, cn


# ----------------------------------------------------------------------------
# Module-exact single-step forward: CustomLSTM.forward(input, state).
# ----------------------------------------------------------------------------
def custom_lstm_forward(inp, state, params, *, mxu_dtype=None):
    """inp: (B, 1, IN); state = (hx (1,B,H), cx (1,B,H)). Returns (hy, (hy, cy))."""
    hx, cx = state
    x = jnp.swapaxes(inp, 0, 1)                 # (1, B, IN): time-major, S = 1
    _, hn, cn = custom_lstm_sequence(x, hx[0], cx[0], params, mxu_dtype=mxu_dtype)
    hy, cy = hn, cn
    return hy, (hy, cy)


# ----------------------------------------------------------------------------
# Pure-JAX reference (direct transcription of the PyTorch forward) + init.
# ----------------------------------------------------------------------------
def custom_lstm_cell_ref(x, hx, cx, raw):
    gates = (x @ raw["weight_ih"].T + raw["bias_ih"]
             + hx @ raw["weight_hh"].T + raw["bias_hh"]
             + cx @ raw["weight_ch"].T + raw["bias_ch"])
    i_g, f_g, o_g = jnp.split(gates, 3, axis=1)
    g_g = (x @ (raw["weight_gh"].T + raw["bias_gh"])
           + hx @ (raw["weight_ghh"].T + raw["bias_ghh"]))
    i_g = jax.nn.sigmoid(i_g)
    f_g = jax.nn.sigmoid(f_g)
    g_g = jnp.tanh(g_g)
    o_g = jax.nn.sigmoid(o_g)
    cy = f_g * cx + i_g * g_g
    hy = o_g * jnp.tanh(cy)
    return hy, cy


def init_custom_lstm_params(key, input_size, hidden_size):
    """Mirrors CustomLSTM.init_weights: weights ~ U(-1/sqrt(H), 1/sqrt(H)), biases ~ U(0, 1)."""
    stdv = 1.0 / math.sqrt(hidden_size)
    ks = jax.random.split(key, 10)
    u = jax.random.uniform
    return {
        "weight_ih":  u(ks[0], (3 * hidden_size, input_size), jnp.float32, -stdv, stdv),
        "weight_hh":  u(ks[1], (3 * hidden_size, hidden_size), jnp.float32, -stdv, stdv),
        "weight_ch":  u(ks[2], (3 * hidden_size, hidden_size), jnp.float32, -stdv, stdv),
        "weight_gh":  u(ks[3], (hidden_size, input_size), jnp.float32, -stdv, stdv),
        "weight_ghh": u(ks[4], (hidden_size, hidden_size), jnp.float32, -stdv, stdv),
        "bias_ih":    u(ks[5], (3 * hidden_size,), jnp.float32, 0.0, 1.0),
        "bias_hh":    u(ks[6], (3 * hidden_size,), jnp.float32, 0.0, 1.0),
        "bias_ch":    u(ks[7], (3 * hidden_size,), jnp.float32, 0.0, 1.0),
        "bias_gh":    u(ks[8], (hidden_size,), jnp.float32, 0.0, 1.0),
        "bias_ghh":   u(ks[9], (hidden_size,), jnp.float32, 0.0, 1.0),
    }


if __name__ == "__main__":
    BATCH, INPUT_SIZE, HIDDEN_SIZE, SEQ = 2, 16, 32, 8

    key = jax.random.PRNGKey(0)
    key, pkey, xkey, hkey, ckey, skey = jax.random.split(key, 6)

    raw = init_custom_lstm_params(pkey, INPUT_SIZE, HIDDEN_SIZE)
    params = prepare_custom_lstm_params(raw)

    # --- single step, exactly the module's forward signature ------------------
    inp = jax.random.normal(xkey, (BATCH, 1, INPUT_SIZE), jnp.float32)
    hx = jax.random.normal(hkey, (1, BATCH, HIDDEN_SIZE), jnp.float32)
    cx = jax.random.normal(ckey, (1, BATCH, HIDDEN_SIZE), jnp.float32)

    hy, (hy2, cy) = custom_lstm_forward(inp, (hx, cx), params)
    jax.block_until_ready((hy, cy))
    assert hy.shape == (BATCH, HIDDEN_SIZE) and cy.shape == (BATCH, HIDDEN_SIZE)

    hy_ref, cy_ref = custom_lstm_cell_ref(inp[:, 0, :], hx[0], cx[0], raw)
    assert float(jnp.max(jnp.abs(hy - hy_ref))) < 5e-2
    assert float(jnp.max(jnp.abs(cy - cy_ref))) < 5e-2

    # --- multi-step recurrence (how the cell is used upstream) ---------------
    x_seq = jax.random.normal(skey, (SEQ, BATCH, INPUT_SIZE), jnp.float32)
    h0 = jnp.zeros((BATCH, HIDDEN_SIZE), jnp.float32)
    c0 = jnp.zeros((BATCH, HIDDEN_SIZE), jnp.float32)

    def scan_ref(xs, h, c):
        def step(carry, xt):
            hh, cc = carry
            hy_t, cy_t = custom_lstm_cell_ref(xt, hh, cc, raw)
            return (hy_t, cy_t), hy_t
        (hn_r, cn_r), ys = lax.scan(step, (h, c), xs)
        return ys, hn_r, cn_r

    y_r, hn_r, cn_r = scan_ref(x_seq, h0, c0)

    # Default: T = S (whole sequence in one grid step, zero chunk-launch overhead).
    y, hn, cn = custom_lstm_sequence(x_seq, h0, c0, params)
    jax.block_until_ready((y, hn, cn))
    assert float(jnp.max(jnp.abs(y - y_r))) < 1e-1
    assert float(jnp.max(jnp.abs(hn - hn_r))) < 1e-1
    assert float(jnp.max(jnp.abs(cn - cn_r))) < 1e-1

    # Multi-chunk path: exercises the state carry across grid steps + c_n epilogue.
    y2, hn2, cn2 = custom_lstm_sequence(x_seq, h0, c0, params, time_chunk=4)
    jax.block_until_ready((y2, hn2, cn2))
    assert float(jnp.max(jnp.abs(y2 - y_r))) < 1e-1
    assert float(jnp.max(jnp.abs(cn2 - cn_r))) < 1e-1

    # bf16-MXU weight slabs (perf-review item for v5e/v6e/v7x); f32 accumulation + state.
    y_bf, hn_bf, cn_bf = custom_lstm_sequence(x_seq, h0, c0, params, mxu_dtype=jnp.bfloat16)
    jax.block_until_ready((y_bf, hn_bf, cn_bf))
    assert float(jnp.max(jnp.abs(y_bf - y_r))) < 2.5e-1

    print("KERNEL_OK")
</pallas_src>

<mosaic_0001>
module attributes {stable_mosaic.version = 11 : i64} {
  func.func @_custom_lstm_recurrence_kernel(%arg0: i32, %arg1: memref<1x2x16xf32, #tpu.memory_space<vmem>>, %arg2: memref<2x32xf32, #tpu.memory_space<vmem>>, %arg3: memref<2x32xf32, #tpu.memory_space<vmem>>, %arg4: memref<16x128xf32, #tpu.memory_space<vmem>>, %arg5: memref<64x128xf32, #tpu.memory_space<vmem>>, %arg6: memref<1x128xf32, #tpu.memory_space<vmem>>, %arg7: memref<1x2x32xf32, #tpu.memory_space<vmem>>, %arg8: memref<2x32xf32, #tpu.memory_space<vmem>>, %arg9: memref<2x64xf32, #tpu.memory_space<vmem>>) attributes {dimension_semantics = [#tpu.dimension_semantics<arbitrary>], iteration_bounds = array<i64: 1>, scalar_prefetch = 0 : i64, scratch_operands = 1 : i64, tpu.core_type = #tpu.core_type<tc>, window_params = [{transform_indices = @transform_0, window_bounds = array<i64: 1, 2, 16>}, {pipeline_mode = #tpu.pipeline_mode<synchronous>, transform_indices = @transform_1, window_bounds = array<i64: 2, 32>}, {pipeline_mode = #tpu.pipeline_mode<synchronous>, transform_indices = @transform_2, window_bounds = array<i64: 2, 32>}, {pipeline_mode = #tpu.pipeline_mode<synchronous>, transform_indices = @transform_3, window_bounds = array<i64: 16, 128>}, {pipeline_mode = #tpu.pipeline_mode<synchronous>, transform_indices = @transform_4, window_bounds = array<i64: 64, 128>}, {pipeline_mode = #tpu.pipeline_mode<synchronous>, transform_indices = @transform_5, window_bounds = array<i64: 1, 128>}, {transform_indices = @transform_6, window_bounds = array<i64: 1, 2, 32>}, {pipeline_mode = #tpu.pipeline_mode<synchronous>, transform_indices = @transform_7, window_bounds = array<i64: 2, 32>}]} {
    %c0_i32 = arith.constant 0 : i32
    %0 = arith.cmpi eq, %arg0, %c0_i32 : i32
    %1 = arith.extui %0 : i1 to i32
    %c0_i32_0 = arith.constant 0 : i32
    %2 = arith.cmpi ne, %1, %c0_i32_0 : i32
    scf.if %2 {
      %c0_22 = arith.constant 0 : index
      %c0_23 = arith.constant 0 : index
      %43 = vector.load %arg2[%c0_22, %c0_23] : memref<2x32xf32, #tpu.memory_space<vmem>>, vector<2x32xf32>
      %c0_24 = arith.constant 0 : index
      %c0_25 = arith.constant 0 : index
      %44 = vector.load %arg9[%c0_24, %c0_25] : memref<2x64xf32, #tpu.memory_space<vmem>>, vector<2x32xf32>
      tpu.vector_store %arg9[%c0_24, %c0_25], %43 {strides = array<i32>} : memref<2x64xf32, #tpu.memory_space<vmem>>, vector<2x32xf32>,
      %c0_26 = arith.constant 0 : index
      %c0_27 = arith.constant 0 : index
      %45 = vector.load %arg3[%c0_26, %c0_27] : memref<2x32xf32, #tpu.memory_space<vmem>>, vector<2x32xf32>
      %c0_28 = arith.constant 0 : index
      %c32_29 = arith.constant 32 : index
      %46 = vector.load %arg9[%c0_28, %c32_29] : memref<2x64xf32, #tpu.memory_space<vmem>>, vector<2x32xf32>
      tpu.vector_store %arg9[%c0_28, %c32_29], %45 {strides = array<i32>} : memref<2x64xf32, #tpu.memory_space<vmem>>, vector<2x32xf32>,
    } else {
    }
    %c0 = arith.constant 0 : index
    %c0_1 = arith.constant 0 : index
    %3 = vector.load %arg4[%c0, %c0_1] : memref<16x128xf32, #tpu.memory_space<vmem>>, vector<16x128xf32>
    %c0_2 = arith.constant 0 : index
    %c0_3 = arith.constant 0 : index
    %4 = vector.load %arg5[%c0_2, %c0_3] : memref<64x128xf32, #tpu.memory_space<vmem>>, vector<64x128xf32>
    %c0_4 = arith.constant 0 : index
    %c0_5 = arith.constant 0 : index
    %5 = vector.load %arg6[%c0_4, %c0_5] : memref<1x128xf32, #tpu.memory_space<vmem>>, vector<1x128xf32>
    %c0_i32_6 = arith.constant 0 : i32
    %6 = arith.index_cast %c0_i32_6 : i32 to index
    %c0_7 = arith.constant 0 : index
    %c0_8 = arith.constant 0 : index
    %7 = vector.load %arg1[%6, %c0_7, %c0_8] : memref<1x2x16xf32, #tpu.memory_space<vmem>>, vector<1x2x16xf32>
    %8 = vector.shape_cast %7 : vector<1x2x16xf32> to vector<2x16xf32>
    %cst = arith.constant dense<0.000000e+00> : vector<2x128xf32>
    %9 = tpu.matmul %8, %3, %cst {dimension_numbers = #tpu.dot_dimension_numbers<[1], [0], [0], [1], [0, 0, 1, 1], [], []>} : vector<2x16xf32>, vector<16x128xf32>, vector<2x128xf32> -> vector<2x128xf32>
    %10 = vector.broadcast %5 : vector<1x128xf32> to vector<2x128xf32>
    %11 = arith.addf %9, %10 : vector<2x128xf32>
    %c0_9 = arith.constant 0 : index
    %c0_10 = arith.constant 0 : index
    %12 = vector.load %arg9[%c0_9, %c0_10] : memref<2x64xf32, #tpu.memory_space<vmem>>, vector<2x64xf32>
    %cst_11 = arith.constant dense<0.000000e+00> : vector<2x128xf32>
    %13 = tpu.matmul %12, %4, %cst_11 {dimension_numbers = #tpu.dot_dimension_numbers<[1], [0], [0], [1], [0, 0, 1, 1], [], []>} : vector<2x64xf32>, vector<64x128xf32>, vector<2x128xf32> -> vector<2x128xf32>
    %14 = arith.addf %11, %13 : vector<2x128xf32>
    %15 = arith.negf %14 : vector<2x128xf32>
    %16 = math.exp %15 : vector<2x128xf32>
    %cst_12 = arith.constant 1.000000e+00 : f32
    %17 = vector.broadcast %cst_12 : f32 to vector<2x128xf32>
    %18 = arith.addf %17, %16 : vector<2x128xf32>
    %19 = arith.divf %17, %18 : vector<2x128xf32>
    %20 = vector.extract_strided_slice %19 {offsets = [0, 0], sizes = [2, 32], strides = [1, 1]} : vector<2x128xf32> to vector<2x32xf32>
    %21 = vector.extract_strided_slice %19 {offsets = [0, 32], sizes = [2, 32], strides = [1, 1]} : vector<2x128xf32> to vector<2x32xf32>
    %22 = vector.extract_strided_slice %19 {offsets = [0, 64], sizes = [2, 32], strides = [1, 1]} : vector<2x128xf32> to vector<2x32xf32>
    %23 = vector.extract_strided_slice %19 {offsets = [0, 96], sizes = [2, 32], strides = [1, 1]} : vector<2x128xf32> to vector<2x32xf32>
    %cst_13 = arith.constant 2.000000e+00 : f32
    %24 = vector.broadcast %cst_13 : f32 to vector<2x32xf32>
    %25 = arith.mulf %24, %23 : vector<2x32xf32>
    %cst_14 = arith.constant 1.000000e+00 : f32
    %26 = vector.broadcast %cst_14 : f32 to vector<2x32xf32>
    %27 = arith.subf %25, %26 : vector<2x32xf32>
    %28 = vector.extract_strided_slice %12 {offsets = [0, 32], sizes = [2, 32], strides = [1, 1]} : vector<2x64xf32> to vector<2x32xf32>
    %29 = arith.mulf %21, %28 : vector<2x32xf32>
    %30 = arith.mulf %20, %27 : vector<2x32xf32>
    %31 = arith.addf %29, %30 : vector<2x32xf32>
    %32 = math.tanh %31 : vector<2x32xf32>
    %33 = arith.mulf %22, %32 : vector<2x32xf32>
    %c0_15 = arith.constant 0 : index
    %c0_16 = arith.constant 0 : index
    %34 = vector.load %arg9[%c0_15, %c0_16] : memref<2x64xf32, #tpu.memory_space<vmem>>, vector<2x32xf32>
    tpu.vector_store %arg9[%c0_15, %c0_16], %33 {strides = array<i32>} : memref<2x64xf32, #tpu.memory_space<vmem>>, vector<2x32xf32>,
    %c0_17 = arith.constant 0 : index
    %c32 = arith.constant 32 : index
    %35 = vector.load %arg9[%c0_17, %c32] : memref<2x64xf32, #tpu.memory_space<vmem>>, vector<2x32xf32>
    tpu.vector_store %arg9[%c0_17, %c32], %31 {strides = array<i32>} : memref<2x64xf32, #tpu.memory_space<vmem>>, vector<2x32xf32>,
    %36 = arith.index_cast %c0_i32_6 : i32 to index
    %c0_18 = arith.constant 0 : index
    %c0_19 = arith.constant 0 : index
    %37 = vector.load %arg7[%36, %c0_18, %c0_19] : memref<1x2x32xf32, #tpu.memory_space<vmem>>, vector<1x2x32xf32>
    %38 = vector.shape_cast %37 : vector<1x2x32xf32> to vector<2x32xf32>
    %39 = vector.shape_cast %33 : vector<2x32xf32> to vector<1x2x32xf32>
    tpu.vector_store %arg7[%36, %c0_18, %c0_19], %39 {strides = array<i32>} : memref<1x2x32xf32, #tpu.memory_space<vmem>>, vector<1x2x32xf32>,
    %c1_i32 = arith.constant 1 : i32
    %c0_i32_20 = arith.constant 0 : i32
    %40 = arith.cmpi eq, %arg0, %c0_i32_20 : i32
    %41 = arith.extui %40 : i1 to i32
    %c0_i32_21 = arith.constant 0 : i32
    %42 = arith.cmpi ne, %41, %c0_i32_21 : i32
    scf.if %42 {
      %c0_22 = arith.constant 0 : index
      %c32_23 = arith.constant 32 : index
      %43 = vector.load %arg9[%c0_22, %c32_23] : memref<2x64xf32, #tpu.memory_space<vmem>>, vector<2x32xf32>
      %c0_24 = arith.constant 0 : index
      %c0_25 = arith.constant 0 : index
      %44 = vector.load %arg8[%c0_24, %c0_25] : memref<2x32xf32, #tpu.memory_space<vmem>>, vector<2x32xf32>
      tpu.vector_store %arg8[%c0_24, %c0_25], %43 {strides = array<i32>} : memref<2x32xf32, #tpu.memory_space<vmem>>, vector<2x32xf32>,
    } else {
    }
    return
  }
  func.func @transform_0(%arg0: i32) -> (i32, i32, i32) {
    %c0_i32 = arith.constant 0 : i32
    %c0_i32_0 = arith.constant 0 : i32
    %c0_i32_1 = arith.constant 0 : i32
    return %arg0, %c0_i32, %c0_i32_0 : i32, i32, i32
  }
  func.func @transform_1(%arg0: i32) -> (i32, i32) {
    %c0_i32 = arith.constant 0 : i32
    %c0_i32_0 = arith.constant 0 : i32
    %c0_i32_1 = arith.constant 0 : i32
    return %c0_i32, %c0_i32_0 : i32, i32
  }
  func.func @transform_2(%arg0: i32) -> (i32, i32) {
    %c0_i32 = arith.constant 0 : i32
    %c0_i32_0 = arith.constant 0 : i32
    %c0_i32_1 = arith.constant 0 : i32
    return %c0_i32, %c0_i32_0 : i32, i32
  }
  func.func @transform_3(%arg0: i32) -> (i32, i32) {
    %c0_i32 = arith.constant 0 : i32
    %c0_i32_0 = arith.constant 0 : i32
    %c0_i32_1 = arith.constant 0 : i32
    return %c0_i32, %c0_i32_0 : i32, i32
  }
  func.func @transform_4(%arg0: i32) -> (i32, i32) {
    %c0_i32 = arith.constant 0 : i32
    %c0_i32_0 = arith.constant 0 : i32
    %c0_i32_1 = arith.constant 0 : i32
    return %c0_i32, %c0_i32_0 : i32, i32
  }
  func.func @transform_5(%arg0: i32) -> (i32, i32) {
    %c0_i32 = arith.constant 0 : i32
    %c0_i32_0 = arith.constant 0 : i32
    %c0_i32_1 = arith.constant 0 : i32
    return %c0_i32, %c0_i32_0 : i32, i32
  }
  func.func @transform_6(%arg0: i32) -> (i32, i32, i32) {
    %c0_i32 = arith.constant 0 : i32
    %c0_i32_0 = arith.constant 0 : i32
    %c0_i32_1 = arith.constant 0 : i32
    return %arg0, %c0_i32, %c0_i32_0 : i32, i32, i32
  }
  func.func @transform_7(%arg0: i32) -> (i32, i32) {
    %c0_i32 = arith.constant 0 : i32
    %c0_i32_0 = arith.constant 0 : i32
    %c0_i32_1 = arith.constant 0 : i32
    return %c0_i32, %c0_i32_0 : i32, i32
  }
}

</mosaic_0001>

<bundles_post_ra>
// kernel: tpu_custom_call.1
= control target key start
LH: loop header
LB: loop body
LE: loop exit
PB: predicated region body
PF: predicated region fallthrough
CT: control target
= control target key end

     0   :  { %13 = vsyncpa [#allocation4], 0  ;;  %s656_s0 = inlined_call_operand.hbm [shape: f32[1,2,16], index: 0, kind: input, shape index: {}]   ;;  %s657_s1 = inlined_call_operand.vmem [shape: f32[2,32], index: 1, kind: input, shape index: {}]   ;;  %s658_s2 = inlined_call_operand.vmem [shape: f32[2,32], index: 2, kind: input, shape index: {}]   ;;  %s659_s3 = inlined_call_operand.hbm [shape: f32[16,128], index: 3, kind: input, shape index: {}]   ;;  %s660_s4 = inlined_call_operand.hbm [shape: f32[64,128], index: 4, kind: input, shape index: {}]   ;;  %s661_s5 = inlined_call_operand.vmem [shape: f32[1,128], index: 5, kind: input, shape index: {}]   ;;  %s662_s6 = inlined_call_operand.hbm [shape: f32[1,2,32], index: 6, kind: output, shape index: {0}]   ;;  %s663_s7 = inlined_call_operand.hbm [shape: f32[2,32], index: 7, kind: output, shape index: {1}]  }
   0x1   :  { %14 = vsyncpa [#allocation7], 0 }
   0x2   :  { %15 = vsyncpa [#allocation5], 0 }
   0x3   :  { %16 = vsyncpa [#allocation11], 0  ;;  %s518_s24 = smov [#allocation6]   ;;  %s400_s28 = scalar_lea.hbm %s659_s3, 256 }
   0x4   :  { %s36_s25 = sshll.u32 %s518_s24, 4  ;;  %p401_p0 = scmp.ne.s32.totalorder %s659_s3, %s400_s28  ;;  %s37_s25 = int_to_ptr.vmem [resolvable:$true] %s36_s25 }
   0x5   :  { %p404_p1 = scmp.lt.u32.totalorder %s400_s28, %s659_s3 }
   0x7   :  { %p406_p2 = pnand %p404_p1, %p401_p0 }
   0x9   :  { %409 = shalt.err (!%p406_p2)
}
   0xa   :  { %s410_s10 = scalar_lea.vmem %s37_s25, 256  ;;  %p415_p4 = scmp.lt.s32.totalorder %s37_s25, %s37_s25 }
   0xb   :  { %p411_p3 = scmp.ne.s32.totalorder %s37_s25, %s410_s10  ;;  %p416_p5 = scmp.lt.s32.totalorder %s410_s10, %s410_s10 }
   0xd   :  { %p417_p6 = por %p416_p5, %p415_p4 }
   0xf   :  { %p418_p7 = pnand %p417_p6, %p411_p3 }
  0x11   :  { %421 = shalt.err (!%p418_p7)
}
  0x12   :  { %s519_s11 = smov 128   ;;  %s520_s12 = smov 8  }
  0x13   :  { %42 = dma.hbm_to_vmem [thread:$0]  %s659_s3, 256, %s37_s25, [#allocation7], %s519_s11, %s519_s11, %s520_s12  }
  0x14   :  { %s521_s15 = smov [#allocation3]   ;;  %s522_s17 = smov [#allocation8]  }
  0x15   :  { %s23_s16 = sshll.u32 %s521_s15, 4  ;;  %s48_s18 = sshll.u32 %s522_s17, 4  ;;  %s24_s16 = int_to_ptr.vmem [resolvable:$true] %s23_s16  ;;  %s49_s18 = int_to_ptr.vmem [resolvable:$true] %s48_s18 }
  0x16   :  { %s422_s21 = scalar_lea.hbm %s656_s0, 32 }
  0x17   :  { %p423_p8 = scmp.ne.s32.totalorder %s656_s0, %s422_s21  ;;  %p426_p9 = scmp.lt.u32.totalorder %s422_s21, %s656_s0 }
  0x19   :  { %p428_p10 = pnand %p426_p9, %p423_p8 }
  0x1b   :  { %431 = shalt.err (!%p428_p10)
}
  0x1c   :  { %s432_s3 = scalar_lea.vmem %s24_s16, 32  ;;  %p437_p12 = scmp.lt.s32.totalorder %s24_s16, %s24_s16 }
  0x1d   :  { %p433_p11 = scmp.ne.s32.totalorder %s24_s16, %s432_s3  ;;  %p438_p13 = scmp.lt.s32.totalorder %s432_s3, %s432_s3 }
  0x1f   :  { %p439_p0 = por %p438_p13, %p437_p12 }
  0x21   :  { %p440_p1 = pnand %p439_p0, %p433_p11 }
  0x23   :  { %443 = shalt.err (!%p440_p1)
}
  0x24   :  { %26 = dma.hbm_to_vmem [thread:$0]  %s656_s0, 32, %s24_s16, [#allocation4]  }
  0x25   :  { %s444_s30 = scalar_lea.hbm %s660_s4, 1024 }
  0x26   :  { %p445_p2 = scmp.ne.s32.totalorder %s660_s4, %s444_s30  ;;  %p448_p3 = scmp.lt.u32.totalorder %s444_s30, %s660_s4 }
  0x28   :  { %p450_p4 = pnand %p448_p3, %p445_p2 }
  0x2a   :  { %453 = shalt.err (!%p450_p4)
}
  0x2b   :  { %s454_s14 = scalar_lea.vmem %s49_s18, 1024  ;;  %p459_p6 = scmp.lt.s32.totalorder %s49_s18, %s49_s18 }
  0x2c   :  { %p455_p5 = scmp.ne.s32.totalorder %s49_s18, %s454_s14  ;;  %p460_p7 = scmp.lt.s32.totalorder %s454_s14, %s454_s14 }
  0x2e   :  { %p461_p8 = por %p460_p7, %p459_p6 }
  0x30   :  { %p462_p9 = pnand %p461_p8, %p455_p5 }
  0x32   :  { %465 = shalt.err (!%p462_p9)
}
  0x33   :  { %54 = dma.hbm_to_vmem [thread:$0]  %s660_s4, 1024, %s49_s18, [#allocation7], %s519_s11, %s519_s11, %s520_s12  }
  0x34   :  { %510 = dma.done.wait [#allocation4], 32  }
  0x35   :  { %511 = vsyncadd [#allocation4], 4294967264 }
  0x36   :  { %512 = dma.done.wait [#allocation7], 1280  }
  0x37   :  { %513 = vsyncadd [#allocation7], 4294966016  ;;  %v523_v0 = vmov 0.0|0.0   ;;  %vm524_vm0 = vmmov 0   ;;  %v525_v1 = vmov 0.0   ;;  %vm71_vm1 = vcmask 254976  }
  0x38   :  { %367 = vmatprep.subr.bf16.mxu0 %v523_v0  ;;  %364 = vmatprep.subr.bf16.mxu1 %v523_v0  ;;  %v73_v2 = vld [vmem:[%s658_s2] sm:$0x3]  ;;  %v82_v3 = vld [vmem:[#allocation8] sm:$0xff]  ;;  %s526_s19 = smov 32   ;;  %v84_v6 = vld [vmem:[#allocation8 + $0x10] sm:$0xff]  ;;  %vm98_vm2 = vcmask 130048  }
  0x39   :  { %342 = vmatprep.mubr.msk.f32.mxu1 %vm524_vm0, %v525_v1  ;;  %361 = vmatprep.mubr.msk.f32.mxu0 %vm524_vm0, %v525_v1  ;;  %v83_v4 = vld [vmem:[#allocation8 + $0x8] sm:$0xff]  ;;  %v85_v7 = vld [vmem:[#allocation8 + $0x18] sm:$0xff]  ;;  %v80_v9 = vld [vmem:[#allocation6] sm:$0xff]  ;;  %vm78_vm3 = vcmask 517376   ;;  %vm173_vm4 = vcmask 523264   ;;  %s528_s12 = smov [#allocation9]  }
  0x3a   :  { %75 = vrot.lane.b32.xlu0 %v73_v2, %s526_s19  ;;  %v368_v5 = vpack.c.bf16 %v83_v4, %v82_v3  ;;  %v70_v8 = vld [vmem:[%s657_s1] sm:$0x3]  ;;  %v371_v10 = vpack.c.bf16 %v85_v7, %v84_v6  ;;  %v81_v11 = vld [vmem:[#allocation6 + $0x8] sm:$0xff]  ;;  %v86_v12 = vld [vmem:[#allocation8 + $0x20] sm:$0xff]  ;;  %s297_s18 = sshll.u32 %s528_s12, 4  ;;  %s298_s18 = int_to_ptr.vmem [resolvable:$true] %s297_s18 }
  0x3b   :  { %72 = vst.msk [vmem:[#allocation2] sm:$0x3] %vm71_vm1, %v70_v8  ;;  %v87_v13 = vld [vmem:[#allocation8 + $0x28] sm:$0xff]  ;;  %v365_v14 = vpack.c.bf16 %v81_v11, %v80_v9  ;;  %v88_v17 = vld [vmem:[#allocation8 + $0x30] sm:$0xff]  ;;  %v89_v18 = vld [vmem:[#allocation8 + $0x38] sm:$0xff]  ;;  %s466_s20 = scalar_lea.vmem %s298_s18, 32  ;;  %p471_p11 = scmp.lt.s32.totalorder %s298_s18, %s298_s18 }
  0x3c   :  { %369 = vmatpush3.bf16.msra.mxu0 %v368_v5  ;;  %v91_v15 = vld [vmem:[#allocation3] sm:$0x3]  ;;  %v374_v16 = vpack.c.bf16 %v87_v13, %v86_v12  ;;  %v377_v19 = vpack.c.bf16 %v89_v18, %v88_v17  ;;  %v321_v24 = vld [vmem:[%s661_s5] ss:$0 sm:$0xff]  ;;  %s527_s5 = smov 64   ;;  %p467_p10 = scmp.ne.s32.totalorder %s298_s18, %s466_s20 }
  0x3d   :  { %370 = vmatprep.subr.bf16.mxu0 %v523_v0  ;;  %366 = vmatpush3.bf16.msra.mxu1 %v365_v14  ;;  %p472_p12 = scmp.lt.s32.totalorder %s466_s20, %s466_s20 }
  0x3f   :  { %p473_p13 = por %p472_p12, %p471_p11 }
  0x40   :  { %372 = vmatpush3.bf16.msra.mxu0 %v371_v10  ;;  %343 = vmatmul.mubr.msk.f32.vlgmr.msra.gmra.mrb[0].mxu1 %vm98_vm2, %v91_v15 }
  0x41   :  { %373 = vmatprep.subr.bf16.mxu0 %v523_v0  ;;  %p474_p0 = pnand %p473_p13, %p467_p10 }
  0x44   :  { %375 = vmatpush3.bf16.msra.mxu0 %v374_v16 }
  0x45   :  { %376 = vmatprep.subr.bf16.mxu0 %v523_v0 }
  0x48   :  { %378 = vmatpush3.bf16.msra.mxu0 %v377_v19 }
  0xac   :  { %v76_v20 = vpop.permute.xlu0 %75 }
  0xad   :  { %79 = vst.msk [vmem:[#allocation2] sm:$0x3] %vm78_vm3, %v76_v20 }
  0xb4   :  { %v172_v21 = vld [vmem:[#allocation2] sm:$0x3] }
  0xb5   :  { %362 = vmatmul.mubr.msk.f32.vlgmr.msra.gmra.mrb[0].mxu0 %vm173_vm4, %v172_v21 }
 0x113   :  { %v168_v22 = vpop.f32.mrb[0].mxu1 }
 0x114   :  { %v344_v23 = vpop.f32.mrb[1].mxu1  ;;  %v169_v25 = vadd.f32 %v321_v24, %v168_v22 }
 0x188   :  { %v243_v26 = vpop.f32.mrb[0].mxu0 }
 0x189   :  { %v247_v27 = vadd.f32 %v243_v26, %v169_v25  ;;  %v363_v28 = vpop.f32.mrb[1].mxu0 }
 0x18b   :  { %v324_v29 = vmul.f32 -1.442695, %v247_v27 }
 0x18d   :  { %394 = vpow2.f32 %v324_v29 }
 0x197   :  { %v395_v30 = vpop.eup %394 }
 0x198   :  { %v251_v31 = vadd.f32 1.0, %v395_v30 }
 0x19a   :  { %396 = vrcp.f32 %v251_v31 }
 0x1a4   :  { %v397_v32 = vpop.eup %396 }
 0x1a5   :  { %v254_v33 = vmul.f32 2.0, %v397_v32  ;;  %v256_v37 = vmul.f32 %v397_v32, %v172_v21 }
 0x1a7   :  { %v325_v34 = vadd.f32 -1.0, %v254_v33 }
 0x1a9   :  { %258 = vrot.lane.b32.xlu0 %v325_v34, %s526_s19 }
 0x21b   :  { %v259_v35 = vpop.permute.xlu0 %258 }
 0x21c   :  { %v261_v36 = vmul.f32 %v397_v32, %v259_v35 }
 0x21e   :  { %263 = vrot.lane.b32.xlu1 %v261_v36, %s526_s19 }
 0x290   :  { %v264_v38 = vpop.permute.xlu1 %263 }
 0x291   :  { %v266_v39 = vadd.f32 %v264_v38, %v256_v37 }
 0x293   :  { %398 = vtanh.f32 %v266_v39 }
 0x29d   :  { %v399_v40 = vpop.eup %398 }
 0x29e   :  { %269 = vrot.lane.b32.xlu1 %v399_v40, %s526_s19 }
 0x310   :  { %v270_v41 = vpop.permute.xlu1 %269 }
 0x311   :  { %v272_v42 = vmul.f32 %v397_v32, %v270_v41 }
 0x313   :  { %274 = vrot.lane.b32.xlu0 %v272_v42, %s527_s5 }
 0x385   :  { %v275_v43 = vpop.permute.xlu0 %274 }
 0x386   :  { %278 = vst.msk [vmem:[#allocation2] sm:$0x3] %vm71_vm1, %v275_v43  ;;  %281 = vst.msk [vmem:[#allocation9] sm:$0x3] %vm71_vm1, %v275_v43 }
 0x387   :  { %280 = vst.msk [vmem:[#allocation2] sm:$0x3] %vm78_vm3, %v266_v39 }
 0x388   :  { %477 = shalt.err (!%p474_p0)
}
 0x389   :  { %s478_s23 = scalar_lea.hbm %s662_s6, 32 }
 0x38a   :  { %p479_p1 = scmp.ne.s32.totalorder %s662_s6, %s478_s23  ;;  %p482_p2 = scmp.lt.u32.totalorder %s478_s23, %s662_s6 }
 0x38c   :  { %p484_p3 = pnand %p482_p2, %p479_p1 }
 0x38e   :  { %487 = shalt.err (!%p484_p3)
}
 0x38f   :  { %300 = dma.vmem_to_hbm [thread:$0]  %s298_s18, 32, %s662_s6, [#allocation5]   ;;  %v285_v44 = vld [vmem:[#allocation2] sm:$0x3] }
 0x390   :  { %s529_s29 = smov 96   ;;  %s530_s30 = smov [#allocation10]  }
 0x391   :  { %287 = vrot.lane.b32.xlu1 %v285_v44, %s529_s29  ;;  %s307_s8 = sshll.u32 %s530_s30, 4  ;;  %s308_s8 = int_to_ptr.vmem [resolvable:$true] %s307_s8 }
 0x392   :  { %s488_s9 = scalar_lea.vmem %s308_s8, 32  ;;  %p493_p5 = scmp.lt.s32.totalorder %s308_s8, %s308_s8 }
 0x393   :  { %p489_p4 = scmp.ne.s32.totalorder %s308_s8, %s488_s9  ;;  %p494_p6 = scmp.lt.s32.totalorder %s488_s9, %s488_s9 }
 0x395   :  { %p495_p7 = por %p494_p6, %p493_p5 }
 0x397   :  { %p496_p8 = pnand %p495_p7, %p489_p4 }
 0x403   :  { %v288_v45 = vpop.permute.xlu1 %287 }
 0x404   :  { %290 = vst.msk [vmem:[#allocation10] sm:$0x3] %vm71_vm1, %v288_v45 }
 0x405   :  { %499 = shalt.err (!%p496_p8)
}
 0x406   :  { %s500_s6 = scalar_lea.hbm %s663_s7, 32 }
 0x407   :  { %p501_p9 = scmp.ne.s32.totalorder %s663_s7, %s500_s6  ;;  %p504_p10 = scmp.lt.u32.totalorder %s500_s6, %s663_s7 }
 0x409   :  { %p506_p11 = pnand %p504_p10, %p501_p9 }
 0x40b   :  { %509 = shalt.err (!%p506_p11)
}
 0x40c   :  { %310 = dma.vmem_to_hbm [thread:$0]  %s308_s8, 32, %s663_s7, [#allocation11]  }
 0x40d   :  { %514 = dma.done.wait [#allocation5], 32  }
 0x40e   :  { %515 = vsyncadd [#allocation5], 4294967264 }
 0x40f   :  { %516 = dma.done.wait [#allocation11], 32  }
 0x410   :  { %517 = vsyncadd [#allocation11], 4294967264 }
 0x411   :  { %317 = vsyncpa [#allocation4], 1 }
 0x412   :  { %318 = vsyncpa [#allocation7], 1 }
 0x413   :  { %319 = vsyncpa [#allocation5], 1 }
 0x414   :  { %320 = vsyncpa [#allocation11], 1 }

</bundles_post_ra>
